<compile_context>
chip_gen: v7x
topology: tpu7x:2x2x1
jax: 0.10.0
libtpu: 0.0.40
codegen_flags: <defaults>
</compile_context>

<pallas_src>
import jax
import jax.numpy as jnp
from jax.experimental import pallas as pl
from jax.experimental.pallas import tpu as pltpu


def _conv_bn_relu_kernel(x_ref, w_ref, bias_ref, o_ref):
    # x_ref:    (Cin, HW)   one image, channels-first, lane dim = HW (bf16)
    # w_ref:    (Cout, Cin) BN-scale-folded 1x1 conv weight (bf16)
    # bias_ref: (Cout, 1)   folded BN bias (f32), broadcast along lanes
    # o_ref:    (Cout, HW)  f32 output
    y = jnp.dot(w_ref[...], x_ref[...], preferred_element_type=jnp.float32)
    o_ref[...] = jnp.maximum(y + bias_ref[...], 0.0).astype(o_ref.dtype)


def fold_bn_into_conv(weight_oihw, gamma, beta, running_mean, running_var,
                      eps=1e-5, compute_dtype=jnp.bfloat16):
    """One-time precompute: fold eval-mode BN into the 1x1 conv weight/bias.

    Returns (w_folded[(Cout, Cin), compute_dtype], bias[(Cout, 1), f32]).
    Call this once (weights / running stats are static across inference calls)
    and reuse the results — it keeps several tiny XLA kernels out of the
    per-call hot path.
    """
    c_out, c_in = weight_oihw.shape[0], weight_oihw.shape[1]
    inv_std = 1.0 / jnp.sqrt(running_var.astype(jnp.float32) + eps)
    scale = gamma.astype(jnp.float32) * inv_std                       # (Cout,)
    w_folded = weight_oihw.reshape(c_out, c_in).astype(jnp.float32) * scale[:, None]
    bias = (beta.astype(jnp.float32)
            - running_mean.astype(jnp.float32) * scale).reshape(c_out, 1)
    return w_folded.astype(compute_dtype), bias


def conv1x1_bn_relu(x_nchw, w_folded, bias):
    """Fused 1x1 conv + BN(eval) + ReLU.  x is NCHW; output is NCHW float32."""
    n, c_in, h, w = x_nchw.shape
    c_out = w_folded.shape[0]
    hw = h * w

    # NCHW -> (N, Cin, H*W): free reshape.  Cast activations to the compute
    # dtype (bf16) so the HBM read and the MXU feed are half-width.
    x3d = x_nchw.reshape(n, c_in, hw).astype(w_folded.dtype)

    # Advisory cost hint for XLA's scheduler around this tiny custom call.
    flops = 2 * n * c_out * c_in * hw
    bytes_accessed = (x3d.size * x3d.dtype.itemsize
                      + w_folded.size * w_folded.dtype.itemsize
                      + bias.size * 4
                      + n * c_out * hw * 4)

    # Per-image working set (~0.6 MiB with bf16 inputs) is far below every
    # generation's scoped-VMEM limit, so one grid step per image is optimal;
    # weight/bias index_maps are constant so they are DMA'd once and stay
    # VMEM-resident across images.
    out3d = pl.pallas_call(
        _conv_bn_relu_kernel,
        out_shape=jax.ShapeDtypeStruct((n, c_out, hw), jnp.float32),
        grid=(n,),
        in_specs=[
            pl.BlockSpec((None, c_in, hw), lambda b: (b, 0, 0)),
            pl.BlockSpec((c_out, c_in), lambda b: (0, 0)),
            pl.BlockSpec((c_out, 1), lambda b: (0, 0)),
        ],
        out_specs=pl.BlockSpec((None, c_out, hw), lambda b: (b, 0, 0)),
        compiler_params=pltpu.CompilerParams(
            dimension_semantics=("parallel",)),
        cost_estimate=pl.CostEstimate(
            flops=flops, transcendentals=0, bytes_accessed=bytes_accessed),
    )(x3d, w_folded, bias)

    # (N, Cout, H*W) -> NCHW: free reshape.
    return out3d.reshape(n, c_out, h, w)


def reference(x_nchw, weight_oihw, gamma, beta, running_mean, running_var,
              eps=1e-5):
    """Pure-JAX f32 reference for correctness checking."""
    n, c_in, h, w = x_nchw.shape
    c_out = weight_oihw.shape[0]
    x_flat = jnp.transpose(x_nchw, (0, 2, 3, 1)).reshape(-1, c_in)
    y = x_flat @ weight_oihw.reshape(c_out, c_in).T
    y = (y - running_mean) / jnp.sqrt(running_var + eps) * gamma + beta
    y = jnp.maximum(y, 0.0)
    return jnp.transpose(y.reshape(n, h, w, c_out), (0, 3, 1, 2))


if __name__ == "__main__":
    key = jax.random.PRNGKey(0)
    k_x, k_w, k_g, k_b, k_m, k_v = jax.random.split(key, 6)

    # Shapes from the PyTorch module: x14 = randn([1, 122, 28, 28]).
    N, C, H, W = 1, 122, 28, 28
    x = jax.random.normal(k_x, (N, C, H, W), dtype=jnp.float32)

    # Deterministic synthetic parameters (shapes match the PyTorch module).
    weight = jax.random.normal(k_w, (C, C, 1, 1), dtype=jnp.float32) * 0.1
    gamma = 1.0 + 0.1 * jax.random.normal(k_g, (C,), dtype=jnp.float32)
    beta = 0.1 * jax.random.normal(k_b, (C,), dtype=jnp.float32)
    running_mean = 0.1 * jax.random.normal(k_m, (C,), dtype=jnp.float32)
    running_var = jax.random.uniform(
        k_v, (C,), dtype=jnp.float32, minval=0.5, maxval=1.5)

    # One-time BN fold (outside the per-call hot path).
    w_folded, bias = fold_bn_into_conv(
        weight, gamma, beta, running_mean, running_var, eps=1e-5,
        compute_dtype=jnp.bfloat16)
    w_folded = jax.block_until_ready(w_folded)

    out = conv1x1_bn_relu(x, w_folded, bias)
    out = jax.block_until_ready(out)

    ref = reference(x, weight, gamma, beta, running_mean, running_var)
    assert out.shape == (N, C, H, W), out.shape
    # bf16 inputs (f32 accumulate): relax tolerance vs. the f32 reference.
    assert jnp.allclose(out, ref, atol=2e-2, rtol=2e-2), \
        float(jnp.max(jnp.abs(out - ref)))

    print("KERNEL_OK")
</pallas_src>

<mosaic_0001>
module attributes {stable_mosaic.version = 11 : i64} {
  func.func @_conv_bn_relu_kernel(%arg0: i32, %arg1: memref<1x122x784xbf16, #tpu.memory_space<vmem>>, %arg2: memref<122x122xbf16, #tpu.memory_space<vmem>>, %arg3: memref<122x1xf32, #tpu.memory_space<vmem>>, %arg4: memref<1x122x784xf32, #tpu.memory_space<vmem>>) attributes {dimension_semantics = [#tpu.dimension_semantics<parallel>], iteration_bounds = array<i64: 1>, scalar_prefetch = 0 : i64, scratch_operands = 0 : i64, tpu.core_type = #tpu.core_type<tc>, window_params = [{transform_indices = @transform_0, window_bounds = array<i64: 1, 122, 784>}, {pipeline_mode = #tpu.pipeline_mode<synchronous>, transform_indices = @transform_1, window_bounds = array<i64: 122, 122>}, {pipeline_mode = #tpu.pipeline_mode<synchronous>, transform_indices = @transform_2, window_bounds = array<i64: 122, 1>}, {transform_indices = @transform_3, window_bounds = array<i64: 1, 122, 784>}]} {
    %c0 = arith.constant 0 : index
    %c0_0 = arith.constant 0 : index
    %0 = vector.load %arg2[%c0, %c0_0] : memref<122x122xbf16, #tpu.memory_space<vmem>>, vector<122x122xbf16>
    %c0_1 = arith.constant 0 : index
    %c0_2 = arith.constant 0 : index
    %c0_3 = arith.constant 0 : index
    %1 = vector.load %arg1[%c0_1, %c0_2, %c0_3] : memref<1x122x784xbf16, #tpu.memory_space<vmem>>, vector<1x122x784xbf16>
    %2 = vector.shape_cast %1 : vector<1x122x784xbf16> to vector<122x784xbf16>
    %cst = arith.constant dense<0.000000e+00> : vector<122x784xf32>
    %3 = tpu.matmul %0, %2, %cst {dimension_numbers = #tpu.dot_dimension_numbers<[1], [0], [0], [1], [0, 0, 1, 1], [], []>} : vector<122x122xbf16>, vector<122x784xbf16>, vector<122x784xf32> -> vector<122x784xf32>
    %c0_4 = arith.constant 0 : index
    %c0_5 = arith.constant 0 : index
    %4 = vector.load %arg3[%c0_4, %c0_5] : memref<122x1xf32, #tpu.memory_space<vmem>>, vector<122x1xf32>
    %5 = vector.broadcast %4 : vector<122x1xf32> to vector<122x784xf32>
    %6 = arith.addf %3, %5 : vector<122x784xf32>
    %cst_6 = arith.constant 0.000000e+00 : f32
    %7 = vector.broadcast %cst_6 : f32 to vector<122x784xf32>
    %8 = arith.maximumf %6, %7 : vector<122x784xf32>
    %c0_7 = arith.constant 0 : index
    %c0_8 = arith.constant 0 : index
    %c0_9 = arith.constant 0 : index
    %9 = vector.load %arg4[%c0_7, %c0_8, %c0_9] : memref<1x122x784xf32, #tpu.memory_space<vmem>>, vector<1x122x784xf32>
    %10 = vector.shape_cast %9 : vector<1x122x784xf32> to vector<122x784xf32>
    %11 = vector.shape_cast %8 : vector<122x784xf32> to vector<1x122x784xf32>
    tpu.vector_store %arg4[%c0_7, %c0_8, %c0_9], %11 {strides = array<i32>} : memref<1x122x784xf32, #tpu.memory_space<vmem>>, vector<1x122x784xf32>,
    return
  }
  func.func @transform_0(%arg0: i32) -> (i32, i32, i32) {
    %c0_i32 = arith.constant 0 : i32
    %c0_i32_0 = arith.constant 0 : i32
    %c0_i32_1 = arith.constant 0 : i32
    return %arg0, %c0_i32, %c0_i32_0 : i32, i32, i32
  }
  func.func @transform_1(%arg0: i32) -> (i32, i32) {
    %c0_i32 = arith.constant 0 : i32
    %c0_i32_0 = arith.constant 0 : i32
    %c0_i32_1 = arith.constant 0 : i32
    return %c0_i32, %c0_i32_0 : i32, i32
  }
  func.func @transform_2(%arg0: i32) -> (i32, i32) {
    %c0_i32 = arith.constant 0 : i32
    %c0_i32_0 = arith.constant 0 : i32
    %c0_i32_1 = arith.constant 0 : i32
    return %c0_i32, %c0_i32_0 : i32, i32
  }
  func.func @transform_3(%arg0: i32) -> (i32, i32, i32) {
    %c0_i32 = arith.constant 0 : i32
    %c0_i32_0 = arith.constant 0 : i32
    %c0_i32_1 = arith.constant 0 : i32
    return %arg0, %c0_i32, %c0_i32_0 : i32, i32, i32
  }
}

</mosaic_0001>

<bundles_post_ra>
// kernel: tpu_custom_call.1
= control target key start
LH: loop header
LB: loop body
LE: loop exit
PB: predicated region body
PF: predicated region fallthrough
CT: control target
= control target key end

     0   :  { %v1464_v1 = vmov 0   ;;  %vm537_vm0 = vcmask 1044480   ;;  %vm512_vm1 = vcmask 998400   ;;  %vm1113_vm2 = vcmask 130048   ;;  %s2310_s0 = inlined_call_operand.vmem [shape: bf16[1,122,784], index: 0, kind: input, shape index: {}]   ;;  %s2311_s1 = inlined_call_operand.vmem [shape: bf16[122,122], index: 1, kind: input, shape index: {}]   ;;  %s2312_s2 = inlined_call_operand.vmem [shape: f32[122,1], index: 2, kind: input, shape index: {}]   ;;  %s2313_s3 = inlined_call_operand.vmem [shape: f32[1,122,784], index: 3, kind: output, shape index: {}]  }
   0x1   :  { %v1376_v0 = vld [vmem:[%s2310_s0 + $0x4] ss:$28 sps:$4 sm:$0xff]   ;;  %591 = vmatprep.mubr.bf16.mxu0 %v1464_v1  ;;  %704 = vmatprep.mubr.bf16.mxu1 %v1464_v1  ;;  %v1379_v3 = vld [vmem:[%s2310_s0 + $0x3c] ss:$28 sps:$4 sm:$0xff]   ;;  %v1382_v5 = vld [vmem:[%s2310_s0 + $0xc] ss:$28 sps:$4 sm:$0xff]  }
   0x2   :  { %v1378_v2 = vld [vmem:[%s2310_s0] ss:$28 sps:$4 sm:$0xff]   ;;  %1374 = vset.pattern.permute.xlu0 %v1464_v1  ;;  %1375 = vset.pattern.permute.xlu1 %v1464_v1  ;;  %v1381_v4 = vld [vmem:[%s2310_s0 + $0x38] ss:$28 sps:$4 sm:$0xff]   ;;  %v1384_v6 = vld [vmem:[%s2310_s0 + $0x8] ss:$28 sps:$4 sm:$0xff]  }
   0x3   :  { %559 = vmatprep.subr.bf16.mxu0 %v1376_v0  ;;  %v1385_v7 = vld [vmem:[%s2310_s0 + $0x74] ss:$28 sps:$4 sm:$0xff]   ;;  %672 = vmatprep.subr.bf16.mxu1 %v1382_v5  ;;  %v1388_v8 = vld [vmem:[%s2310_s0 + $0x44] ss:$28 sps:$4 sm:$0xff]   ;;  %v1391_v11 = vld [vmem:[%s2310_s0 + $0xac] ss:$28 sps:$4 sm:$0xff]  }
   0x4   :  { %560 = vmatpush1.bf16.msra.mxu0 %v1378_v2  ;;  %673 = vmatpush1.bf16.msra.mxu1 %v1384_v6  ;;  %v1390_v9 = vld [vmem:[%s2310_s0 + $0x40] ss:$28 sps:$4 sm:$0xff]   ;;  %v1387_v10 = vld [vmem:[%s2310_s0 + $0x70] ss:$28 sps:$4 sm:$0xff]   ;;  %v1396_v13 = vld [vmem:[%s2310_s0 + $0x78] ss:$28 sps:$4 sm:$0xff]  }
   0x5   :  { %561 = vmatprep.subr.bf16.mxu0 %v1379_v3  ;;  %674 = vmatprep.subr.bf16.mxu1 %v1388_v8  ;;  %v1394_v12 = vld [vmem:[%s2310_s0 + $0x7c] ss:$28 sps:$4 sm:$0xff]   ;;  %v1393_v14 = vld [vmem:[%s2310_s0 + $0xa8] ss:$28 sps:$4 sm:$0xff]   ;;  %v1400_v15 = vld [vmem:[%s2310_s0 + $0xb4] ss:$28 sps:$4 sm:$0xff]  }
   0x6   :  { %v1397_v16 = vld [vmem:[%s2310_s0 + $0xe4] ss:$28 sps:$4 sm:$0xff]   ;;  %v1402_v17 = vld [vmem:[%s2310_s0 + $0xb0] ss:$28 sps:$4 sm:$0xff]   ;;  %v1403_v20 = vld [vmem:[%s2310_s0 + $0x11c] ss:$28 sps:$4 sm:$0xff]  }
   0x7   :  { %v1399_v18 = vld [vmem:[%s2310_s0 + $0xe0] ss:$28 sps:$4 sm:$0xff]   ;;  %v1406_v19 = vld [vmem:[%s2310_s0 + $0xec] ss:$28 sps:$4 sm:$0xff]   ;;  %v1405_v21 = vld [vmem:[%s2310_s0 + $0x118] ss:$28 sps:$4 sm:$0xff]  }
   0x8   :  { %562 = vmatpush1.bf16.msra.mxu0 %v1381_v4  ;;  %675 = vmatpush1.bf16.msra.mxu1 %v1390_v9  ;;  %v1408_v22 = vld [vmem:[%s2310_s0 + $0xe8] ss:$28 sps:$4 sm:$0xff]   ;;  %v1409_v24 = vld [vmem:[%s2310_s0 + $0x154] ss:$28 sps:$4 sm:$0xff]   ;;  %v1414_v25 = vld [vmem:[%s2310_s0 + $0x120] ss:$28 sps:$4 sm:$0xff]  }
   0x9   :  { %563 = vmatprep.subr.bf16.mxu0 %v1385_v7  ;;  %676 = vmatprep.subr.bf16.mxu1 %v1394_v12  ;;  %v1412_v23 = vld [vmem:[%s2310_s0 + $0x124] ss:$28 sps:$4 sm:$0xff]   ;;  %v1415_v26 = vld [vmem:[%s2310_s0 + $0x18c] ss:$28 sps:$4 sm:$0x1f]   ;;  %v1652_v50 = vld [vmem:[%s2311_s1 + $0x10] sm:$0xff]  }
   0xa   :  { %v1417_v27 = vld [vmem:[%s2310_s0 + $0x188] ss:$28 sps:$4 sm:$0x1f]   ;;  %v1411_v28 = vld [vmem:[%s2310_s0 + $0x150] ss:$28 sps:$4 sm:$0xff]   ;;  %v98_v60 = vld [vmem:[%s2312_s2 + $0x18] sm:$0xff] }
   0xb   :  { %v1418_v29 = vld [vmem:[%s2310_s0 + $0x15c] ss:$28 sps:$4 sm:$0xff]   ;;  %v1425_v31 = vld [vmem:[%s2310_s0 + $0x194] ss:$28 sps:$4 sm:$0x1f]   ;;  %v539_v33 = vsel %vm537_vm0, %v1417_v27, 0 }
   0xc   :  { %564 = vmatpush1.bf16.msra.mxu0 %v1387_v10  ;;  %677 = vmatpush1.bf16.msra.mxu1 %v1396_v13  ;;  %v1420_v30 = vld [vmem:[%s2310_s0 + $0x158] ss:$28 sps:$4 sm:$0xff]   ;;  %v1427_v32 = vld [vmem:[%s2310_s0 + $0x190] ss:$28 sps:$4 sm:$0x1f]   ;;  %v1593_v35 = vld [vmem:[%s2311_s1] sm:$0xff]  }
   0xd   :  { %565 = vmatprep.subr.bf16.mxu0 %v1391_v11  ;;  %678 = vmatprep.subr.bf16.mxu1 %v1400_v15  ;;  %v1424_v34 = vld [vmem:[%s2310_s0 + $0x14] ss:$28 sps:$4 sm:$0xff]   ;;  %v545_v37 = vsel %vm537_vm0, %v1427_v32, 0  ;;  %v1431_v38 = vld [vmem:[%s2310_s0 + $0x4c] ss:$28 sps:$4 sm:$0xff]   ;;  %v95_v51 = vld [vmem:[%s2312_s2] sm:$0xff] }
   0xe   :  { %v1422_v36 = vld [vmem:[%s2310_s0 + $0x10] ss:$28 sps:$4 sm:$0xff]   ;;  %v1444_v39 = vld [vmem:[%s2310_s0 + $0x18] ss:$28 sps:$4 sm:$0xff]   ;;  %v1429_v40 = vld [vmem:[%s2310_s0 + $0x48] ss:$28 sps:$4 sm:$0xff]   ;;  %113 = vperm.xlu0 %1374, %v95_v51  }
   0xf   :  { %v1435_v41 = vld [vmem:[%s2310_s0 + $0x84] ss:$28 sps:$4 sm:$0xff]   ;;  %v1449_v42 = vld [vmem:[%s2310_s0 + $0x50] ss:$28 sps:$4 sm:$0xff]   ;;  %v1439_v45 = vld [vmem:[%s2310_s0 + $0xbc] ss:$28 sps:$4 sm:$0xff]  }
  0x10   :  { %566 = vmatpush1.bf16.msra.mxu0 %v1393_v14  ;;  %679 = vmatpush1.bf16.msra.mxu1 %v1402_v17  ;;  %v1623_v43 = vld [vmem:[%s2311_s1 + $0x8] sm:$0xff]   ;;  %v1433_v44 = vld [vmem:[%s2310_s0 + $0x80] ss:$28 sps:$4 sm:$0xff]   ;;  %v1437_v47 = vld [vmem:[%s2310_s0 + $0xb8] ss:$28 sps:$4 sm:$0xff]   ;;  %vm1219_vm3 = vcmask 123904  }
  0x11   :  { %567 = vmatprep.subr.bf16.mxu0 %v1397_v16  ;;  %680 = vmatprep.subr.bf16.mxu1 %v1406_v19  ;;  %v1450_v46 = vld [vmem:[%s2310_s0 + $0x88] ss:$28 sps:$4 sm:$0xff]   ;;  %v1455_v48 = vld [vmem:[%s2310_s0 + $0xc0] ss:$28 sps:$4 sm:$0xff]   ;;  %v1443_v49 = vld [vmem:[%s2310_s0 + $0xf4] ss:$28 sps:$4 sm:$0xff]  }
  0x12   :  { %v1441_v52 = vld [vmem:[%s2310_s0 + $0xf0] ss:$28 sps:$4 sm:$0xff]   ;;  %v1456_v54 = vld [vmem:[%s2310_s0 + $0xf8] ss:$28 sps:$4 sm:$0xff]   ;;  %v1446_v57 = vld [vmem:[%s2310_s0 + $0x128] ss:$28 sps:$4 sm:$0xff]  }
  0x13   :  { %v1448_v53 = vld [vmem:[%s2310_s0 + $0x12c] ss:$28 sps:$4 sm:$0xff]   ;;  %v97_v55 = vld [vmem:[%s2312_s2 + $0x10] sm:$0xff]  ;;  %v1454_v59 = vld [vmem:[%s2310_s0 + $0x164] ss:$28 sps:$4 sm:$0xff]  }
  0x14   :  { %568 = vmatpush1.bf16.msra.mxu0 %v1399_v18  ;;  %681 = vmatpush1.bf16.msra.mxu1 %v1408_v22  ;;  %v96_v56 = vld [vmem:[%s2312_s2 + $0x8] sm:$0xff]  ;;  %v1693_v61 = vld [vmem:[%s2311_s1 + $0x18] sm:$0xff]   ;;  %v99_v62 = vld [vmem:[%s2312_s2 + $0x20] sm:$0xff] }
  0x15   :  { %569 = vmatprep.subr.bf16.mxu0 %v1403_v20  ;;  %682 = vmatprep.subr.bf16.mxu1 %v1412_v23  ;;  %v1461_v58 = vld [vmem:[%s2310_s0 + $0x130] ss:$28 sps:$4 sm:$0xff]   ;;  %v1452_v63 = vld [vmem:[%s2310_s0 + $0x160] ss:$28 sps:$4 sm:$0xff]   ;;  %v1462_v3 = vld [vmem:[%s2310_s0 + $0x168] ss:$28 sps:$4 sm:$0xff]  }
  0x16   :  { %123 = vperm.xlu1 %1375, %v97_v55   ;;  %118 = vperm.xlu0 %1374, %v96_v56   ;;  %v1458_v0 = vld [vmem:[%s2310_s0 + $0x19c] ss:$28 sps:$4 sm:$0x1f]   ;;  %v100_v4 = vld [vmem:[%s2312_s2 + $0x28] sm:$0xff]  ;;  %v101_v7 = vld [vmem:[%s2312_s2 + $0x30] sm:$0xff] }
  0x17   :  { %v1460_v2 = vld [vmem:[%s2310_s0 + $0x198] ss:$28 sps:$4 sm:$0x1f]   ;;  %v1463_v5 = vld [vmem:[%s2310_s0 + $0x1a0] ss:$28 sps:$4 sm:$0x1f]  }
  0x18   :  { %570 = vmatpush1.bf16.msra.mxu0 %v1405_v21  ;;  %683 = vmatpush1.bf16.msra.mxu1 %v1414_v25  ;;  %v551_v6 = vsel %vm537_vm0, %v1460_v2, 0  ;;  %v1440_v8 = vld [vmem:[%s2311_s1 + $0x20] sm:$0xff]   ;;  %v102_v9 = vld [vmem:[%s2312_s2 + $0x38] sm:$0xff]  ;;  %v557_v10 = vsel %vm537_vm0, %v1463_v5, 0  ;;  %v104_v12 = vld [vmem:[%s2312_s2 + $0x48] sm:$0xff] }
  0x19   :  { %571 = vmatprep.subr.bf16.mxu0 %v1409_v24  ;;  %684 = vmatprep.subr.bf16.mxu1 %v1418_v29  ;;  %v103_v11 = vld [vmem:[%s2312_s2 + $0x40] sm:$0xff]  ;;  %v105_v13 = vld [vmem:[%s2312_s2 + $0x50] sm:$0xff]  ;;  %v1445_v14 = vld [vmem:[%s2311_s1 + $0x28] sm:$0xff]  }
  0x1a   :  { %128 = vperm.xlu1 %1375, %v98_v60   ;;  %133 = vperm.xlu0 %1374, %v99_v62   ;;  %v106_v15 = vld [vmem:[%s2312_s2 + $0x58] sm:$0xff]  ;;  %v107_v16 = vld [vmem:[%s2312_s2 + $0x60] sm:$0xff]  ;;  %v108_v17 = vld [vmem:[%s2312_s2 + $0x68] sm:$0xff] }
  0x1b   :  { %v109_v18 = vld [vmem:[%s2312_s2 + $0x70] sm:$0xff]  ;;  %v110_v20 = vld [vmem:[%s2312_s2 + $0x78] sm:$0x3] }
  0x1c   :  { %572 = vmatpush1.bf16.msra.mxu0 %v1411_v28  ;;  %685 = vmatpush1.bf16.msra.mxu1 %v1420_v30  ;;  %v1451_v19 = vld [vmem:[%s2311_s1 + $0x30] sm:$0xff]   ;;  %v1457_v21 = vld [vmem:[%s2311_s1 + $0x38] sm:$0x1f]  }
  0x1d   :  { %1289 = vmatprep.subr.msk.bf16.mxu0 %vm537_vm0, %v1415_v26  ;;  %1298 = vmatprep.subr.msk.bf16.mxu1 %vm537_vm0, %v1425_v31 }
  0x1e   :  { %138 = vperm.xlu1 %1375, %v100_v4   ;;  %143 = vperm.xlu0 %1374, %v101_v7  }
  0x20   :  { %574 = vmatpush1.bf16.msra.mxu0 %v539_v33  ;;  %687 = vmatpush1.bf16.msra.mxu1 %v545_v37 }
  0x21   :  { %785 = vmatprep.subr.bf16.mxu0 %v1424_v34  ;;  %1340 = vmatprep.subr.bf16.mxu1 %v1444_v39 }
  0x22   :  { %148 = vperm.xlu1 %1375, %v102_v9   ;;  %153 = vperm.xlu0 %1374, %v103_v11  }
  0x23   :  { %1290 = vmatmul.mubr.msk.bf16.vlgmr.msra.gmra.mrb[0].mxu0 %vm512_vm1, %v1593_v35  ;;  %1299 = vmatmul.mubr.msk.bf16.vlgmr.msra.gmra.mrb[0].mxu1 %vm512_vm1, %v1593_v35 }
  0x24   :  { %786 = vmatpush1.bf16.msra.mxu0 %v1422_v36  ;;  %601 = vmatprep.mubr.bf16.mxu0 %v1464_v1 }
  0x25   :  { %787 = vmatprep.subr.bf16.mxu0 %v1431_v38  ;;  %714 = vmatprep.mubr.bf16.mxu1 %v1464_v1 }
  0x26   :  { %1341 = vmatpush3.bf16.msra.mxu1 %v1444_v39  ;;  %158 = vperm.xlu1 %1375, %v104_v12  }
  0x27   :  { %1342 = vmatprep.subr.bf16.mxu1 %v1449_v42  ;;  %163 = vperm.xlu0 %1374, %v105_v13  }
  0x28   :  { %788 = vmatpush1.bf16.msra.mxu0 %v1429_v40 }
  0x29   :  { %789 = vmatprep.subr.bf16.mxu0 %v1435_v41 }
  0x2a   :  { %1343 = vmatpush3.bf16.msra.mxu1 %v1449_v42  ;;  %168 = vperm.xlu1 %1375, %v106_v15  }
  0x2b   :  { %1291 = vmatmul.mubr.msk.bf16.gmra.mrb[4].mxu0 %vm512_vm1, %v1623_v43  ;;  %1344 = vmatprep.subr.bf16.mxu1 %v1450_v46 }
  0x2c   :  { %611 = vmatprep.mubr.bf16.mxu0 %v1464_v1  ;;  %790 = vmatpush1.bf16.msra.mxu0 %v1433_v44 }
  0x2d   :  { %791 = vmatprep.subr.bf16.mxu0 %v1439_v45  ;;  %1300 = vmatmul.mubr.msk.bf16.gmra.mrb[4].mxu1 %vm512_vm1, %v1623_v43 }
  0x2e   :  { %724 = vmatprep.mubr.bf16.mxu1 %v1464_v1  ;;  %1345 = vmatpush3.bf16.msra.mxu1 %v1450_v46 }
  0x2f   :  { %1346 = vmatprep.subr.bf16.mxu1 %v1455_v48  ;;  %173 = vperm.xlu0 %1374, %v107_v16  }
  0x30   :  { %792 = vmatpush1.bf16.msra.mxu0 %v1437_v47  ;;  %178 = vperm.xlu1 %1375, %v108_v17  }
  0x31   :  { %793 = vmatprep.subr.bf16.mxu0 %v1443_v49 }
  0x32   :  { %1347 = vmatpush3.bf16.msra.mxu1 %v1455_v48 }
  0x33   :  { %1292 = vmatmul.mubr.msk.bf16.gmra.mrb[8].mxu0 %vm512_vm1, %v1652_v50  ;;  %1348 = vmatprep.subr.bf16.mxu1 %v1456_v54 }
  0x34   :  { %621 = vmatprep.mubr.bf16.mxu0 %v1464_v1  ;;  %794 = vmatpush1.bf16.msra.mxu0 %v1441_v52 }
  0x35   :  { %795 = vmatprep.subr.bf16.mxu0 %v1448_v53  ;;  %1301 = vmatmul.mubr.msk.bf16.gmra.mrb[8].mxu1 %vm512_vm1, %v1652_v50 }
  0x36   :  { %734 = vmatprep.mubr.bf16.mxu1 %v1464_v1  ;;  %1349 = vmatpush3.bf16.msra.mxu1 %v1456_v54 }
  0x37   :  { %1350 = vmatprep.subr.bf16.mxu1 %v1461_v58  ;;  %183 = vperm.xlu0 %1374, %v109_v18  }
  0x38   :  { %796 = vmatpush1.bf16.msra.mxu0 %v1446_v57  ;;  %188 = vperm.xlu1 %1375, %v110_v20  }
  0x39   :  { %797 = vmatprep.subr.bf16.mxu0 %v1454_v59 }
  0x3a   :  { %1351 = vmatpush3.bf16.msra.mxu1 %v1461_v58 }
  0x3b   :  { %1293 = vmatmul.mubr.msk.bf16.gmra.mrb[12].mxu0 %vm512_vm1, %v1693_v61  ;;  %1352 = vmatprep.subr.bf16.mxu1 %v1462_v3 }
  0x3c   :  { %631 = vmatprep.mubr.bf16.mxu0 %v1464_v1  ;;  %798 = vmatpush1.bf16.msra.mxu0 %v1452_v63 }
  0x3d   :  { %1307 = vmatprep.subr.msk.bf16.mxu0 %vm537_vm0, %v1458_v0  ;;  %1302 = vmatmul.mubr.msk.bf16.gmra.mrb[12].mxu1 %vm512_vm1, %v1693_v61 }
  0x3e   :  { %744 = vmatprep.mubr.bf16.mxu1 %v1464_v1  ;;  %1353 = vmatpush3.bf16.msra.mxu1 %v1462_v3 }
  0x3f   :  { %1372 = vmatprep.subr.msk.bf16.mxu1 %vm537_vm0, %v1463_v5 }
  0x40   :  { %800 = vmatpush1.bf16.msra.mxu0 %v551_v6 }
  0x42   :  { %1355 = vmatpush3.bf16.msra.mxu1 %v557_v10 }
  0x43   :  { %1294 = vmatmul.mubr.msk.bf16.gmra.mrb[16].mxu0 %vm512_vm1, %v1440_v8 }
  0x44   :  { %641 = vmatprep.mubr.bf16.mxu0 %v1464_v1 }
  0x45   :  { %1303 = vmatmul.mubr.msk.bf16.gmra.mrb[16].mxu1 %vm512_vm1, %v1440_v8 }
  0x46   :  { %754 = vmatprep.mubr.bf16.mxu1 %v1464_v1 }
  0x4b   :  { %1295 = vmatmul.mubr.msk.bf16.gmra.mrb[20].mxu0 %vm512_vm1, %v1445_v14 }
  0x4c   :  { %651 = vmatprep.mubr.bf16.mxu0 %v1464_v1 }
  0x4d   :  { %1304 = vmatmul.mubr.msk.bf16.gmra.mrb[20].mxu1 %vm512_vm1, %v1445_v14 }
  0x4e   :  { %764 = vmatprep.mubr.bf16.mxu1 %v1464_v1 }
  0x53   :  { %1296 = vmatmul.mubr.msk.bf16.gmra.mrb[24].mxu0 %vm512_vm1, %v1451_v19 }
  0x54   :  { %661 = vmatprep.mubr.bf16.mxu0 %v1464_v1 }
  0x55   :  { %1305 = vmatmul.mubr.msk.bf16.gmra.mrb[24].mxu1 %vm512_vm1, %v1451_v19 }
  0x56   :  { %774 = vmatprep.mubr.bf16.mxu1 %v1464_v1 }
  0x5b   :  { %1297 = vmatmul.mubr.msk.bf16.gmra.mrb[28].mxu0 %vm512_vm1, %v1457_v21 }
  0x5c   :  { %817 = vmatprep.mubr.bf16.mxu0 %v1464_v1 }
  0x5d   :  { %1306 = vmatmul.mubr.msk.bf16.gmra.mrb[28].mxu1 %vm512_vm1, %v1457_v21 }
  0x5e   :  { %1356 = vmatprep.mubr.msk.bf16.mxu1 %vm512_vm1, %v1593_v35 }
  0x63   :  { %1308 = vmatmul.mubr.msk.bf16.vlgmr.msra.gmra.mrb[32].mxu0 %vm512_vm1, %v1593_v35 }
  0x64   :  { %827 = vmatprep.mubr.bf16.mxu0 %v1464_v1 }
  0x65   :  { %1357 = vmatmul.mubr.msk.bf16.vlgmr.msra.gmra.mrb[32].mxu1 %vm512_vm1, %v1623_v43 }
  0x66   :  { %1360 = vmatprep.mubr.msk.bf16.mxu1 %vm512_vm1, %v1652_v50 }
  0x6b   :  { %1309 = vmatmul.mubr.msk.bf16.gmra.mrb[36].mxu0 %vm512_vm1, %v1623_v43 }
  0x6c   :  { %837 = vmatprep.mubr.bf16.mxu0 %v1464_v1 }
  0x6d   :  { %1361 = vmatmul.mubr.msk.bf16.gmra.mrb[36].mxu1 %vm512_vm1, %v1693_v61 }
  0x6e   :  { %1364 = vmatprep.mubr.msk.bf16.mxu1 %vm512_vm1, %v1440_v8 }
  0x73   :  { %1310 = vmatmul.mubr.msk.bf16.gmra.mrb[40].mxu0 %vm512_vm1, %v1652_v50 }
  0x74   :  { %847 = vmatprep.mubr.bf16.mxu0 %v1464_v1 }
  0x75   :  { %1365 = vmatmul.mubr.msk.bf16.gmra.mrb[40].mxu1 %vm512_vm1, %v1445_v14 }
  0x76   :  { %1368 = vmatprep.mubr.msk.bf16.mxu1 %vm512_vm1, %v1451_v19 }
  0x7b   :  { %1311 = vmatmul.mubr.msk.bf16.gmra.mrb[44].mxu0 %vm512_vm1, %v1693_v61 }
  0x7c   :  { %857 = vmatprep.mubr.bf16.mxu0 %v1464_v1 }
  0x7d   :  { %1369 = vmatmul.mubr.msk.bf16.gmra.mrb[44].mxu1 %vm512_vm1, %v1457_v21 }
  0x83   :  { %1312 = vmatmul.mubr.msk.bf16.gmra.mrb[48].mxu0 %vm512_vm1, %v1440_v8 }
  0x84   :  { %867 = vmatprep.mubr.bf16.mxu0 %v1464_v1 }
  0x8b   :  { %1313 = vmatmul.mubr.msk.bf16.gmra.mrb[52].mxu0 %vm512_vm1, %v1445_v14 }
  0x8c   :  { %877 = vmatprep.mubr.bf16.mxu0 %v1464_v1 }
  0x8d   :  { %v1815_v22 = vpop.permute.xlu0 %113 }
  0x93   :  { %1314 = vmatmul.mubr.msk.bf16.gmra.mrb[56].mxu0 %vm512_vm1, %v1451_v19 }
  0x94   :  { %887 = vmatprep.mubr.bf16.mxu0 %v1464_v1 }
  0x95   :  { %v1817_v24 = vpop.permute.xlu0 %118  ;;  %v1821_v29 = vpop.permute.xlu1 %123 }
  0x99   :  { %v1841_v47 = vpop.permute.xlu1 %128  ;;  %v1867_v3 = vpop.permute.xlu0 %133 }
  0x9b   :  { %1315 = vmatmul.mubr.msk.bf16.gmra.mrb[60].mxu0 %vm512_vm1, %v1457_v21 }
  0x9d   :  { %v1877_v10 = vpop.permute.xlu1 %138 }
  0xf6   :  { %v593_v23 = vpop.f32.mrb[0].mxu0  ;;  %v706_v1 = vpop.f32.mrb[0].mxu1 }
  0xf7   :  { %v594_v25 = vadd.f32 %v593_v23, %v1815_v22  ;;  %v595_v26 = vpop.f32.mrb[1].mxu0  ;;  %v707_v35 = vadd.f32 %v706_v1, %v1815_v22  ;;  %v708_v36 = vpop.f32.mrb[1].mxu1 }
  0xf8   :  { %v596_v27 = vadd.f32 %v595_v26, %v1815_v22  ;;  %v597_v28 = vpop.f32.mrb[2].mxu0  ;;  %v709_v38 = vadd.f32 %v708_v36, %v1815_v22  ;;  %v710_v39 = vpop.f32.mrb[2].mxu1 }
  0xf9   :  { %v995_v30 = vmax.f32 %v594_v25, 0.0  ;;  %v598_v31 = vadd.f32 %v597_v28, %v1817_v24  ;;  %v599_v32 = vpop.f32.mrb[3].mxu0  ;;  %v997_v41 = vmax.f32 %v707_v35, 0.0  ;;  %v711_v42 = vadd.f32 %v710_v39, %v1817_v24  ;;  %v712_v43 = vpop.f32.mrb[3].mxu1 }
  0xfa   :  { %v996_v33 = vmax.f32 %v596_v27, 0.0  ;;  %v600_v34 = vadd.f32 %v599_v32, %v1817_v24  ;;  %v998_v44 = vmax.f32 %v709_v38, 0.0  ;;  %v713_v45 = vadd.f32 %v712_v43, %v1817_v24  ;;  %v1903_v32 = vpop.permute.xlu0 %143  ;;  %v1913_v38 = vpop.permute.xlu1 %148 }
  0xfb   :  { %1107 = vst [vmem:[%s2313_s3] sm:$0xff] %v995_v30  ;;  %v1002_v37 = vmax.f32 %v598_v31, 0.0  ;;  %1109 = vst [vmem:[%s2313_s3 + $0x10] sm:$0xff] %v997_v41  ;;  %v1004_v48 = vmax.f32 %v711_v42, 0.0 }
  0xfc   :  { %1108 = vst [vmem:[%s2313_s3 + $0x8] sm:$0xff] %v996_v33  ;;  %v1003_v40 = vmax.f32 %v600_v34, 0.0  ;;  %1110 = vst [vmem:[%s2313_s3 + $0x18] sm:$0xff] %v998_v44  ;;  %v1005_v51 = vmax.f32 %v713_v45, 0.0 }
  0xfd   :  { %1115 = vst [vmem:[%s2313_s3 + $0x38] sm:$0xff] %v1002_v37  ;;  %1117 = vst [vmem:[%s2313_s3 + $0x48] sm:$0xff] %v1004_v48 }
  0xfe   :  { %1116 = vst [vmem:[%s2313_s3 + $0x40] sm:$0xff] %v1003_v40  ;;  %v603_v46 = vpop.f32.mrb[4].mxu0  ;;  %1118 = vst [vmem:[%s2313_s3 + $0x50] sm:$0xff] %v1005_v51 }
  0xff   :  { %v604_v49 = vadd.f32 %v603_v46, %v1821_v29  ;;  %v605_v50 = vpop.f32.mrb[5].mxu0 }
 0x100   :  { %v606_v52 = vadd.f32 %v605_v50, %v1821_v29  ;;  %v607_v53 = vpop.f32.mrb[6].mxu0  ;;  %v716_v57 = vpop.f32.mrb[4].mxu1 }
 0x101   :  { %v1009_v54 = vmax.f32 %v604_v49, 0.0  ;;  %v608_v55 = vadd.f32 %v607_v53, %v1841_v47  ;;  %v609_v56 = vpop.f32.mrb[7].mxu0  ;;  %v717_v60 = vadd.f32 %v716_v57, %v1821_v29  ;;  %v718_v61 = vpop.f32.mrb[5].mxu1 }
 0x102   :  { %v1010_v58 = vmax.f32 %v606_v52, 0.0  ;;  %v610_v59 = vadd.f32 %v609_v56, %v1841_v47  ;;  %v719_v63 = vadd.f32 %v718_v61, %v1821_v29  ;;  %v720_v0 = vpop.f32.mrb[6].mxu1 }
 0x103   :  { %1122 = vst [vmem:[%s2313_s3 + $0x70] sm:$0xff] %v1009_v54  ;;  %v1016_v62 = vmax.f32 %v608_v55, 0.0  ;;  %v1011_v4 = vmax.f32 %v717_v60, 0.0  ;;  %v721_v5 = vadd.f32 %v720_v0, %v1841_v47  ;;  %v722_v6 = vpop.f32.mrb[7].mxu1 }
 0x104   :  { %1123 = vst [vmem:[%s2313_s3 + $0x78] sm:$0xff] %v1010_v58  ;;  %v1017_v2 = vmax.f32 %v610_v59, 0.0  ;;  %v1012_v7 = vmax.f32 %v719_v63, 0.0  ;;  %v723_v8 = vadd.f32 %v722_v6, %v1841_v47  ;;  %v1939_v58 = vpop.permute.xlu0 %153 }
 0x105   :  { %1129 = vst [vmem:[%s2313_s3 + $0xa8] sm:$0xff] %v1016_v62  ;;  %1124 = vst [vmem:[%s2313_s3 + $0x80] sm:$0xff] %v1011_v4  ;;  %v1018_v11 = vmax.f32 %v721_v5, 0.0 }
 0x106   :  { %1130 = vst [vmem:[%s2313_s3 + $0xb0] sm:$0xff] %v1017_v2  ;;  %v613_v9 = vpop.f32.mrb[8].mxu0  ;;  %1125 = vst [vmem:[%s2313_s3 + $0x88] sm:$0xff] %v1012_v7  ;;  %v1019_v14 = vmax.f32 %v723_v8, 0.0  ;;  %v1949_v2 = vpop.permute.xlu1 %158 }
 0x107   :  { %v614_v12 = vadd.f32 %v613_v9, %v1867_v3  ;;  %v615_v13 = vpop.f32.mrb[9].mxu0  ;;  %1131 = vst [vmem:[%s2313_s3 + $0xb8] sm:$0xff] %v1018_v11 }
 0x108   :  { %v616_v15 = vadd.f32 %v615_v13, %v1867_v3  ;;  %v617_v16 = vpop.f32.mrb[10].mxu0  ;;  %1132 = vst [vmem:[%s2313_s3 + $0xc0] sm:$0xff] %v1019_v14  ;;  %v726_v20 = vpop.f32.mrb[8].mxu1 }
 0x109   :  { %v1023_v17 = vmax.f32 %v614_v12, 0.0  ;;  %v618_v18 = vadd.f32 %v617_v16, %v1877_v10  ;;  %v619_v19 = vpop.f32.mrb[11].mxu0  ;;  %v727_v25 = vadd.f32 %v726_v20, %v1867_v3  ;;  %v728_v26 = vpop.f32.mrb[9].mxu1 }
 0x10a   :  { %v1024_v21 = vmax.f32 %v616_v15, 0.0  ;;  %v620_v23 = vadd.f32 %v619_v19, %v1877_v10  ;;  %v729_v28 = vadd.f32 %v728_v26, %v1867_v3  ;;  %v730_v30 = vpop.f32.mrb[10].mxu1 }
 0x10b   :  { %1136 = vst [vmem:[%s2313_s3 + $0xe0] sm:$0xff] %v1023_v17  ;;  %v1030_v27 = vmax.f32 %v618_v18, 0.0  ;;  %v1025_v1 = vmax.f32 %v727_v25, 0.0  ;;  %v731_v33 = vadd.f32 %v730_v30, %v1877_v10  ;;  %v732_v34 = vpop.f32.mrb[11].mxu1  ;;  %v1975_v25 = vpop.permute.xlu0 %163 }
 0x10c   :  { %1137 = vst [vmem:[%s2313_s3 + $0xe8] sm:$0xff] %v1024_v21  ;;  %v1031_v31 = vmax.f32 %v620_v23, 0.0  ;;  %v1026_v35 = vmax.f32 %v729_v28, 0.0  ;;  %v733_v36 = vadd.f32 %v732_v34, %v1877_v10 }
 0x10d   :  { %1143 = vst [vmem:[%s2313_s3 + $0x118] sm:$0xff] %v1030_v27  ;;  %1138 = vst [vmem:[%s2313_s3 + $0xf0] sm:$0xff] %v1025_v1  ;;  %v1032_v39 = vmax.f32 %v731_v33, 0.0  ;;  %v1985_v33 = vpop.permute.xlu1 %168 }
 0x10e   :  { %1144 = vst [vmem:[%s2313_s3 + $0x120] sm:$0xff] %v1031_v31  ;;  %v623_v37 = vpop.f32.mrb[12].mxu0  ;;  %1139 = vst [vmem:[%s2313_s3 + $0xf8] sm:$0xff] %v1026_v35  ;;  %v1033_v42 = vmax.f32 %v733_v36, 0.0 }
 0x10f   :  { %v624_v40 = vadd.f32 %v623_v37, %v1903_v32  ;;  %v625_v41 = vpop.f32.mrb[13].mxu0  ;;  %1145 = vst [vmem:[%s2313_s3 + $0x128] sm:$0xff] %v1032_v39 }
 0x110   :  { %v626_v43 = vadd.f32 %v625_v41, %v1903_v32  ;;  %v627_v44 = vpop.f32.mrb[14].mxu0  ;;  %1146 = vst [vmem:[%s2313_s3 + $0x130] sm:$0xff] %v1033_v42  ;;  %v736_v49 = vpop.f32.mrb[12].mxu1 }
 0x111   :  { %v1037_v45 = vmax.f32 %v624_v40, 0.0  ;;  %v628_v46 = vadd.f32 %v627_v44, %v1913_v38  ;;  %v629_v48 = vpop.f32.mrb[15].mxu0  ;;  %v737_v52 = vadd.f32 %v736_v49, %v1903_v32  ;;  %v738_v53 = vpop.f32.mrb[13].mxu1 }
 0x112   :  { %v1038_v50 = vmax.f32 %v626_v43, 0.0  ;;  %v630_v51 = vadd.f32 %v629_v48, %v1913_v38  ;;  %v739_v55 = vadd.f32 %v738_v53, %v1903_v32  ;;  %v740_v56 = vpop.f32.mrb[14].mxu1 }
 0x113   :  { %1150 = vst [vmem:[%s2313_s3 + $0x150] sm:$0xff] %v1037_v45  ;;  %v1044_v54 = vmax.f32 %v628_v46, 0.0  ;;  %v1039_v59 = vmax.f32 %v737_v52, 0.0  ;;  %v741_v60 = vadd.f32 %v740_v56, %v1913_v38  ;;  %v742_v61 = vpop.f32.mrb[15].mxu1 }
 0x114   :  { %1151 = vst [vmem:[%s2313_s3 + $0x158] sm:$0xff] %v1038_v50  ;;  %v1045_v57 = vmax.f32 %v630_v51, 0.0  ;;  %v1040_v62 = vmax.f32 %v739_v55, 0.0  ;;  %v743_v63 = vadd.f32 %v742_v61, %v1913_v38 }
 0x115   :  { %1157 = vst [vmem:[%s2313_s3 + $0x188] sm:$0xff] %v1044_v54  ;;  %1152 = vst [vmem:[%s2313_s3 + $0x160] sm:$0xff] %v1039_v59  ;;  %v1046_v4 = vmax.f32 %v741_v60, 0.0  ;;  %v2011_v54 = vpop.permute.xlu0 %173 }
 0x116   :  { %1158 = vst [vmem:[%s2313_s3 + $0x190] sm:$0xff] %v1045_v57  ;;  %v633_v0 = vpop.f32.mrb[16].mxu0  ;;  %1153 = vst [vmem:[%s2313_s3 + $0x168] sm:$0xff] %v1040_v62  ;;  %v1047_v7 = vmax.f32 %v743_v63, 0.0  ;;  %v2021_v62 = vpop.permute.xlu1 %178 }
 0x117   :  { %v634_v5 = vadd.f32 %v633_v0, %v1939_v58  ;;  %v635_v6 = vpop.f32.mrb[17].mxu0  ;;  %1159 = vst [vmem:[%s2313_s3 + $0x198] sm:$0xff] %v1046_v4 }
 0x118   :  { %v636_v8 = vadd.f32 %v635_v6, %v1939_v58  ;;  %v637_v9 = vpop.f32.mrb[18].mxu0  ;;  %1160 = vst [vmem:[%s2313_s3 + $0x1a0] sm:$0xff] %v1047_v7  ;;  %v746_v14 = vpop.f32.mrb[16].mxu1 }
 0x119   :  { %v1051_v11 = vmax.f32 %v634_v5, 0.0  ;;  %v638_v12 = vadd.f32 %v637_v9, %v1949_v2  ;;  %v639_v13 = vpop.f32.mrb[19].mxu0  ;;  %v747_v17 = vadd.f32 %v746_v14, %v1939_v58  ;;  %v748_v18 = vpop.f32.mrb[17].mxu1 }
 0x11a   :  { %v1052_v15 = vmax.f32 %v636_v8, 0.0  ;;  %v640_v16 = vadd.f32 %v639_v13, %v1949_v2  ;;  %v749_v20 = vadd.f32 %v748_v18, %v1939_v58  ;;  %v750_v21 = vpop.f32.mrb[18].mxu1 }
 0x11b   :  { %1164 = vst [vmem:[%s2313_s3 + $0x1c0] sm:$0xff] %v1051_v11  ;;  %v1058_v19 = vmax.f32 %v638_v12, 0.0  ;;  %v1053_v26 = vmax.f32 %v747_v17, 0.0  ;;  %v751_v27 = vadd.f32 %v750_v21, %v1949_v2  ;;  %v752_v28 = vpop.f32.mrb[19].mxu1  ;;  %v2047_v21 = vpop.permute.xlu0 %183 }
 0x11c   :  { %1165 = vst [vmem:[%s2313_s3 + $0x1c8] sm:$0xff] %v1052_v15  ;;  %v1059_v23 = vmax.f32 %v640_v16, 0.0  ;;  %v1054_v30 = vmax.f32 %v749_v20, 0.0  ;;  %v753_v31 = vadd.f32 %v752_v28, %v1949_v2 }
 0x11d   :  { %1171 = vst [vmem:[%s2313_s3 + $0x1f8] sm:$0xff] %v1058_v19  ;;  %1166 = vst [vmem:[%s2313_s3 + $0x1d0] sm:$0xff] %v1053_v26  ;;  %v1060_v34 = vmax.f32 %v751_v27, 0.0 }
 0x11e   :  { %1172 = vst [vmem:[%s2313_s3 + $0x200] sm:$0xff] %v1059_v23  ;;  %v643_v1 = vpop.f32.mrb[20].mxu0  ;;  %1167 = vst [vmem:[%s2313_s3 + $0x1d8] sm:$0xff] %v1054_v30  ;;  %v1061_v37 = vmax.f32 %v753_v31, 0.0 }
 0x11f   :  { %v644_v35 = vadd.f32 %v643_v1, %v1975_v25  ;;  %v645_v36 = vpop.f32.mrb[21].mxu0  ;;  %1173 = vst [vmem:[%s2313_s3 + $0x208] sm:$0xff] %v1060_v34  ;;  %v2057_v1 = vpop.permute.xlu1 %188 }
 0x120   :  { %v646_v39 = vadd.f32 %v645_v36, %v1975_v25  ;;  %v647_v40 = vpop.f32.mrb[22].mxu0  ;;  %1174 = vst [vmem:[%s2313_s3 + $0x210] sm:$0xff] %v1061_v37  ;;  %v756_v44 = vpop.f32.mrb[20].mxu1 }
 0x121   :  { %v1065_v41 = vmax.f32 %v644_v35, 0.0  ;;  %v648_v42 = vadd.f32 %v647_v40, %v1985_v33  ;;  %v649_v43 = vpop.f32.mrb[23].mxu0  ;;  %v757_v48 = vadd.f32 %v756_v44, %v1975_v25  ;;  %v758_v49 = vpop.f32.mrb[21].mxu1 }
 0x122   :  { %v1066_v45 = vmax.f32 %v646_v39, 0.0  ;;  %v650_v46 = vadd.f32 %v649_v43, %v1985_v33  ;;  %v759_v51 = vadd.f32 %v758_v49, %v1975_v25  ;;  %v760_v52 = vpop.f32.mrb[22].mxu1 }
 0x123   :  { %1178 = vst [vmem:[%s2313_s3 + $0x230] sm:$0xff] %v1065_v41  ;;  %v1072_v50 = vmax.f32 %v648_v42, 0.0  ;;  %v1067_v55 = vmax.f32 %v757_v48, 0.0  ;;  %v761_v56 = vadd.f32 %v760_v52, %v1985_v33  ;;  %v762_v57 = vpop.f32.mrb[23].mxu1 }
 0x124   :  { %1179 = vst [vmem:[%s2313_s3 + $0x238] sm:$0xff] %v1066_v45  ;;  %v1073_v53 = vmax.f32 %v650_v46, 0.0  ;;  %v1068_v59 = vmax.f32 %v759_v51, 0.0  ;;  %v763_v60 = vadd.f32 %v762_v57, %v1985_v33 }
 0x125   :  { %1185 = vst [vmem:[%s2313_s3 + $0x268] sm:$0xff] %v1072_v50  ;;  %1180 = vst [vmem:[%s2313_s3 + $0x240] sm:$0xff] %v1067_v55  ;;  %v1074_v63 = vmax.f32 %v761_v56, 0.0 }
 0x126   :  { %1186 = vst [vmem:[%s2313_s3 + $0x270] sm:$0xff] %v1073_v53  ;;  %v653_v61 = vpop.f32.mrb[24].mxu0  ;;  %1181 = vst [vmem:[%s2313_s3 + $0x248] sm:$0xff] %v1068_v59  ;;  %v1075_v5 = vmax.f32 %v763_v60, 0.0 }
 0x127   :  { %v654_v0 = vadd.f32 %v653_v61, %v2011_v54  ;;  %v655_v4 = vpop.f32.mrb[25].mxu0  ;;  %1187 = vst [vmem:[%s2313_s3 + $0x278] sm:$0xff] %v1074_v63 }
 0x128   :  { %v656_v6 = vadd.f32 %v655_v4, %v2011_v54  ;;  %v657_v7 = vpop.f32.mrb[26].mxu0  ;;  %1188 = vst [vmem:[%s2313_s3 + $0x280] sm:$0xff] %v1075_v5  ;;  %v766_v12 = vpop.f32.mrb[24].mxu1 }
 0x129   :  { %v1079_v8 = vmax.f32 %v654_v0, 0.0  ;;  %v658_v9 = vadd.f32 %v657_v7, %v2021_v62  ;;  %v659_v11 = vpop.f32.mrb[27].mxu0  ;;  %v767_v15 = vadd.f32 %v766_v12, %v2011_v54  ;;  %v768_v16 = vpop.f32.mrb[25].mxu1 }
 0x12a   :  { %v1080_v13 = vmax.f32 %v656_v6, 0.0  ;;  %v660_v14 = vadd.f32 %v659_v11, %v2021_v62  ;;  %v769_v18 = vadd.f32 %v768_v16, %v2011_v54  ;;  %v770_v19 = vpop.f32.mrb[26].mxu1 }
 0x12b   :  { %1192 = vst [vmem:[%s2313_s3 + $0x2a0] sm:$0xff] %v1079_v8  ;;  %v1086_v17 = vmax.f32 %v658_v9, 0.0  ;;  %v1081_v23 = vmax.f32 %v767_v15, 0.0  ;;  %v771_v26 = vadd.f32 %v770_v19, %v2021_v62  ;;  %v772_v27 = vpop.f32.mrb[27].mxu1 }
 0x12c   :  { %1193 = vst [vmem:[%s2313_s3 + $0x2a8] sm:$0xff] %v1080_v13  ;;  %v1087_v20 = vmax.f32 %v660_v14, 0.0  ;;  %v1082_v28 = vmax.f32 %v769_v18, 0.0  ;;  %v773_v30 = vadd.f32 %v772_v27, %v2021_v62 }
 0x12d   :  { %1199 = vst [vmem:[%s2313_s3 + $0x2d8] sm:$0xff] %v1086_v17  ;;  %1194 = vst [vmem:[%s2313_s3 + $0x2b0] sm:$0xff] %v1081_v23  ;;  %v1088_v34 = vmax.f32 %v771_v26, 0.0 }
 0x12e   :  { %1200 = vst [vmem:[%s2313_s3 + $0x2e0] sm:$0xff] %v1087_v20  ;;  %v663_v31 = vpop.f32.mrb[28].mxu0  ;;  %1195 = vst [vmem:[%s2313_s3 + $0x2b8] sm:$0xff] %v1082_v28  ;;  %v1089_v37 = vmax.f32 %v773_v30, 0.0 }
 0x12f   :  { %v664_v35 = vadd.f32 %v663_v31, %v2047_v21  ;;  %v665_v36 = vpop.f32.mrb[29].mxu0  ;;  %1201 = vst [vmem:[%s2313_s3 + $0x2e8] sm:$0xff] %v1088_v34 }
 0x130   :  { %v666_v39 = vadd.f32 %v665_v36, %v2047_v21  ;;  %v667_v40 = vpop.f32.mrb[30].mxu0  ;;  %1202 = vst [vmem:[%s2313_s3 + $0x2f0] sm:$0xff] %v1089_v37  ;;  %v776_v44 = vpop.f32.mrb[28].mxu1 }
 0x131   :  { %v1093_v41 = vmax.f32 %v664_v35, 0.0  ;;  %v668_v42 = vadd.f32 %v667_v40, %v2057_v1  ;;  %v669_v43 = vpop.f32.mrb[31].mxu0  ;;  %v777_v48 = vadd.f32 %v776_v44, %v2047_v21  ;;  %v778_v49 = vpop.f32.mrb[29].mxu1 }
 0x132   :  { %v1094_v45 = vmax.f32 %v666_v39, 0.0  ;;  %v670_v46 = vadd.f32 %v669_v43, %v2057_v1  ;;  %v779_v51 = vadd.f32 %v778_v49, %v2047_v21  ;;  %v780_v52 = vpop.f32.mrb[30].mxu1 }
 0x133   :  { %1206 = vst [vmem:[%s2313_s3 + $0x310] sm:$0xff] %v1093_v41  ;;  %v1100_v50 = vmax.f32 %v668_v42, 0.0  ;;  %v1095_v55 = vmax.f32 %v777_v48, 0.0  ;;  %v781_v56 = vadd.f32 %v780_v52, %v2057_v1  ;;  %v782_v57 = vpop.f32.mrb[31].mxu1 }
 0x134   :  { %1207 = vst [vmem:[%s2313_s3 + $0x318] sm:$0xff] %v1094_v45  ;;  %v1101_v53 = vmax.f32 %v670_v46, 0.0  ;;  %v1096_v59 = vmax.f32 %v779_v51, 0.0  ;;  %v783_v60 = vadd.f32 %v782_v57, %v2057_v1 }
 0x135   :  { %1213 = vst [vmem:[%s2313_s3 + $0x348] sm:$0x3] %v1100_v50  ;;  %1208 = vst [vmem:[%s2313_s3 + $0x320] sm:$0xff] %v1095_v55  ;;  %v1102_v63 = vmax.f32 %v781_v56, 0.0 }
 0x136   :  { %1214 = vst [vmem:[%s2313_s3 + $0x350] sm:$0x3] %v1101_v53  ;;  %v819_v61 = vpop.f32.mrb[32].mxu0  ;;  %1209 = vst [vmem:[%s2313_s3 + $0x328] sm:$0xff] %v1096_v59  ;;  %v1103_v5 = vmax.f32 %v783_v60, 0.0 }
 0x137   :  { %v820_v0 = vadd.f32 %v819_v61, %v1815_v22  ;;  %v821_v4 = vpop.f32.mrb[33].mxu0  ;;  %1215 = vst [vmem:[%s2313_s3 + $0x358] sm:$0x3] %v1102_v63 }
 0x138   :  { %v822_v6 = vadd.f32 %v821_v4, %v1815_v22  ;;  %v823_v7 = vpop.f32.mrb[34].mxu0  ;;  %1216 = vst [vmem:[%s2313_s3 + $0x360] sm:$0x3] %v1103_v5  ;;  %v1358_v12 = vpop.f32.mrb[32].mxu1 }
 0x139   :  { %v999_v8 = vmax.f32 %v820_v0, 0.0  ;;  %v824_v9 = vadd.f32 %v823_v7, %v1817_v24  ;;  %v825_v11 = vpop.f32.mrb[35].mxu0  ;;  %v941_v15 = vadd.f32 %v1358_v12, %v1821_v29  ;;  %v932_v16 = vpop.f32.mrb[33].mxu1 }
 0x13a   :  { %v1000_v13 = vmax.f32 %v822_v6, 0.0  ;;  %v826_v14 = vadd.f32 %v825_v11, %v1817_v24  ;;  %v933_v18 = vadd.f32 %v932_v16, %v1815_v22  ;;  %v1359_v19 = vpop.f32.mrb[34].mxu1 }
 0x13b   :  { %1111 = vst [vmem:[%s2313_s3 + $0x20] sm:$0xff] %v999_v8  ;;  %v1006_v17 = vmax.f32 %v824_v9, 0.0  ;;  %v1015_v23 = vmax.f32 %v941_v15, 0.0  ;;  %v944_v26 = vadd.f32 %v1359_v19, %v1841_v47  ;;  %v935_v27 = vpop.f32.mrb[35].mxu1 }
 0x13c   :  { %1112 = vst [vmem:[%s2313_s3 + $0x28] sm:$0xff] %v1000_v13  ;;  %v1007_v20 = vmax.f32 %v826_v14, 0.0  ;;  %v1001_v28 = vmax.f32 %v933_v18, 0.0  ;;  %v936_v30 = vadd.f32 %v935_v27, %v1817_v24 }
 0x13d   :  { %1119 = vst [vmem:[%s2313_s3 + $0x58] sm:$0xff] %v1006_v17  ;;  %1128 = vst.msk [vmem:[%s2313_s3 + $0xa0] sm:$0xff] %vm1113_vm2, %v1015_v23  ;;  %v1022_v31 = vmax.f32 %v944_v26, 0.0 }
 0x13e   :  { %1120 = vst [vmem:[%s2313_s3 + $0x60] sm:$0xff] %v1007_v20  ;;  %v829_v22 = vpop.f32.mrb[36].mxu0  ;;  %1114 = vst.msk [vmem:[%s2313_s3 + $0x30] sm:$0xff] %vm1113_vm2, %v1001_v28  ;;  %v1008_v24 = vmax.f32 %v936_v30, 0.0 }
 0x13f   :  { %v830_v34 = vadd.f32 %v829_v22, %v1821_v29  ;;  %v831_v35 = vpop.f32.mrb[37].mxu0  ;;  %1135 = vst.msk [vmem:[%s2313_s3 + $0xd8] sm:$0xff] %vm1113_vm2, %v1022_v31 }
 0x140   :  { %v832_v36 = vadd.f32 %v831_v35, %v1821_v29  ;;  %v833_v37 = vpop.f32.mrb[38].mxu0  ;;  %1121 = vst.msk [vmem:[%s2313_s3 + $0x68] sm:$0xff] %vm1113_vm2, %v1008_v24  ;;  %v1362_v42 = vpop.f32.mrb[36].mxu1 }
 0x141   :  { %v1013_v39 = vmax.f32 %v830_v34, 0.0  ;;  %v834_v40 = vadd.f32 %v833_v37, %v1841_v47  ;;  %v835_v41 = vpop.f32.mrb[39].mxu0  ;;  %v957_v29 = vadd.f32 %v1362_v42, %v1903_v32  ;;  %v948_v45 = vpop.f32.mrb[37].mxu1 }
 0x142   :  { %v1014_v43 = vmax.f32 %v832_v36, 0.0  ;;  %v836_v44 = vadd.f32 %v835_v41, %v1841_v47  ;;  %v949_v48 = vadd.f32 %v948_v45, %v1867_v3  ;;  %v1363_v49 = vpop.f32.mrb[38].mxu1 }
 0x143   :  { %1126 = vst [vmem:[%s2313_s3 + $0x90] sm:$0xff] %v1013_v39  ;;  %v1020_v46 = vmax.f32 %v834_v40, 0.0  ;;  %v1043_v51 = vmax.f32 %v957_v29, 0.0  ;;  %v960_v52 = vadd.f32 %v1363_v49, %v1913_v38  ;;  %v951_v47 = vpop.f32.mrb[39].mxu1 }
 0x144   :  { %1127 = vst [vmem:[%s2313_s3 + $0x98] sm:$0xff] %v1014_v43  ;;  %v1021_v50 = vmax.f32 %v836_v44, 0.0  ;;  %v1029_v53 = vmax.f32 %v949_v48, 0.0  ;;  %v952_v55 = vadd.f32 %v951_v47, %v1877_v10 }
 0x145   :  { %1133 = vst [vmem:[%s2313_s3 + $0xc8] sm:$0xff] %v1020_v46  ;;  %1156 = vst.msk [vmem:[%s2313_s3 + $0x180] sm:$0xff] %vm1113_vm2, %v1043_v51  ;;  %v1050_v57 = vmax.f32 %v960_v52, 0.0 }
 0x146   :  { %1134 = vst [vmem:[%s2313_s3 + $0xd0] sm:$0xff] %v1021_v50  ;;  %v839_v56 = vpop.f32.mrb[40].mxu0  ;;  %1142 = vst.msk [vmem:[%s2313_s3 + $0x110] sm:$0xff] %vm1113_vm2, %v1029_v53  ;;  %v1036_v61 = vmax.f32 %v952_v55, 0.0 }
 0x147   :  { %v840_v59 = vadd.f32 %v839_v56, %v1867_v3  ;;  %v841_v60 = vpop.f32.mrb[41].mxu0  ;;  %1163 = vst.msk [vmem:[%s2313_s3 + $0x1b8] sm:$0xff] %vm1113_vm2, %v1050_v57 }
 0x148   :  { %v842_v63 = vadd.f32 %v841_v60, %v1867_v3  ;;  %v843_v0 = vpop.f32.mrb[42].mxu0  ;;  %1149 = vst.msk [vmem:[%s2313_s3 + $0x148] sm:$0xff] %vm1113_vm2, %v1036_v61  ;;  %v1366_v7 = vpop.f32.mrb[40].mxu1 }
 0x149   :  { %v1027_v4 = vmax.f32 %v840_v59, 0.0  ;;  %v844_v5 = vadd.f32 %v843_v0, %v1877_v10  ;;  %v845_v6 = vpop.f32.mrb[43].mxu0  ;;  %v973_v3 = vadd.f32 %v1366_v7, %v1975_v25  ;;  %v964_v11 = vpop.f32.mrb[41].mxu1 }
 0x14a   :  { %v1028_v8 = vmax.f32 %v842_v63, 0.0  ;;  %v846_v9 = vadd.f32 %v845_v6, %v1877_v10  ;;  %v965_v13 = vadd.f32 %v964_v11, %v1939_v58  ;;  %v1367_v14 = vpop.f32.mrb[42].mxu1 }
 0x14b   :  { %1140 = vst [vmem:[%s2313_s3 + $0x100] sm:$0xff] %v1027_v4  ;;  %v1034_v12 = vmax.f32 %v844_v5, 0.0  ;;  %v1071_v16 = vmax.f32 %v973_v3, 0.0  ;;  %v976_v17 = vadd.f32 %v1367_v14, %v1985_v33  ;;  %v967_v10 = vpop.f32.mrb[43].mxu1 }
 0x14c   :  { %1141 = vst [vmem:[%s2313_s3 + $0x108] sm:$0xff] %v1028_v8  ;;  %v1035_v15 = vmax.f32 %v846_v9, 0.0  ;;  %v1057_v18 = vmax.f32 %v965_v13, 0.0  ;;  %v968_v19 = vadd.f32 %v967_v10, %v1949_v2 }
 0x14d   :  { %1147 = vst [vmem:[%s2313_s3 + $0x138] sm:$0xff] %v1034_v12  ;;  %1184 = vst.msk [vmem:[%s2313_s3 + $0x260] sm:$0xff] %vm1113_vm2, %v1071_v16  ;;  %v1078_v23 = vmax.f32 %v976_v17, 0.0 }
 0x14e   :  { %1148 = vst [vmem:[%s2313_s3 + $0x140] sm:$0xff] %v1035_v15  ;;  %v849_v20 = vpop.f32.mrb[44].mxu0  ;;  %1170 = vst.msk [vmem:[%s2313_s3 + $0x1f0] sm:$0xff] %vm1113_vm2, %v1057_v18  ;;  %v1064_v28 = vmax.f32 %v968_v19, 0.0 }
 0x14f   :  { %v850_v26 = vadd.f32 %v849_v20, %v1903_v32  ;;  %v851_v27 = vpop.f32.mrb[45].mxu0  ;;  %1191 = vst.msk [vmem:[%s2313_s3 + $0x298] sm:$0xff] %vm1113_vm2, %v1078_v23 }
 0x150   :  { %v852_v30 = vadd.f32 %v851_v27, %v1903_v32  ;;  %v853_v22 = vpop.f32.mrb[46].mxu0  ;;  %1177 = vst.msk [vmem:[%s2313_s3 + $0x228] sm:$0xff] %vm1113_vm2, %v1064_v28  ;;  %v1370_v24 = vpop.f32.mrb[44].mxu1 }
 0x151   :  { %v1041_v31 = vmax.f32 %v850_v26, 0.0  ;;  %v854_v34 = vadd.f32 %v853_v22, %v1913_v38  ;;  %v855_v35 = vpop.f32.mrb[47].mxu0  ;;  %v989_v32 = vadd.f32 %v1370_v24, %v2047_v21  ;;  %v980_v39 = vpop.f32.mrb[45].mxu1 }
 0x152   :  { %v1042_v36 = vmax.f32 %v852_v30, 0.0  ;;  %v856_v37 = vadd.f32 %v855_v35, %v1913_v38  ;;  %v981_v41 = vadd.f32 %v980_v39, %v2011_v54  ;;  %v1371_v42 = vpop.f32.mrb[46].mxu1 }
 0x153   :  { %1154 = vst [vmem:[%s2313_s3 + $0x170] sm:$0xff] %v1041_v31  ;;  %v1048_v40 = vmax.f32 %v854_v34, 0.0  ;;  %v1099_v44 = vmax.f32 %v989_v32, 0.0  ;;  %v992_v29 = vadd.f32 %v1371_v42, %v2057_v1  ;;  %v983_v38 = vpop.f32.mrb[47].mxu1 }
 0x154   :  { %1155 = vst [vmem:[%s2313_s3 + $0x178] sm:$0xff] %v1042_v36  ;;  %v1049_v43 = vmax.f32 %v856_v37, 0.0  ;;  %v1085_v45 = vmax.f32 %v981_v41, 0.0  ;;  %v984_v46 = vadd.f32 %v983_v38, %v2021_v62 }
 0x155   :  { %1161 = vst [vmem:[%s2313_s3 + $0x1a8] sm:$0xff] %v1048_v40  ;;  %1212 = vst.msk [vmem:[%s2313_s3 + $0x340] sm:$0xff] %vm1113_vm2, %v1099_v44  ;;  %v1106_v48 = vmax.f32 %v992_v29, 0.0 }
 0x156   :  { %1162 = vst [vmem:[%s2313_s3 + $0x1b0] sm:$0xff] %v1049_v43  ;;  %v859_v49 = vpop.f32.mrb[48].mxu0  ;;  %1198 = vst.msk [vmem:[%s2313_s3 + $0x2d0] sm:$0xff] %vm1113_vm2, %v1085_v45  ;;  %v1092_v51 = vmax.f32 %v984_v46, 0.0 }
 0x157   :  { %v860_v50 = vadd.f32 %v859_v49, %v1939_v58  ;;  %v861_v52 = vpop.f32.mrb[49].mxu0  ;;  %1220 = vst.msk [vmem:[%s2313_s3 + $0x378] sm:$0x3] %vm1219_vm3, %v1106_v48 }
 0x158   :  { %v862_v47 = vadd.f32 %v861_v52, %v1939_v58  ;;  %v863_v53 = vpop.f32.mrb[50].mxu0  ;;  %1205 = vst.msk [vmem:[%s2313_s3 + $0x308] sm:$0xff] %vm1113_vm2, %v1092_v51 }
 0x159   :  { %v1055_v55 = vmax.f32 %v860_v50, 0.0  ;;  %v864_v56 = vadd.f32 %v863_v53, %v1949_v2  ;;  %v865_v57 = vpop.f32.mrb[51].mxu0 }
 0x15a   :  { %v1056_v59 = vmax.f32 %v862_v47, 0.0  ;;  %v866_v60 = vadd.f32 %v865_v57, %v1949_v2 }
 0x15b   :  { %1168 = vst [vmem:[%s2313_s3 + $0x1e0] sm:$0xff] %v1055_v55  ;;  %v1062_v61 = vmax.f32 %v864_v56, 0.0 }
 0x15c   :  { %1169 = vst [vmem:[%s2313_s3 + $0x1e8] sm:$0xff] %v1056_v59  ;;  %v1063_v58 = vmax.f32 %v866_v60, 0.0 }
 0x15d   :  { %1175 = vst [vmem:[%s2313_s3 + $0x218] sm:$0xff] %v1062_v61 }
 0x15e   :  { %1176 = vst [vmem:[%s2313_s3 + $0x220] sm:$0xff] %v1063_v58  ;;  %v869_v63 = vpop.f32.mrb[52].mxu0 }
 0x15f   :  { %v870_v2 = vadd.f32 %v869_v63, %v1975_v25  ;;  %v871_v0 = vpop.f32.mrb[53].mxu0 }
 0x160   :  { %v872_v4 = vadd.f32 %v871_v0, %v1975_v25  ;;  %v873_v5 = vpop.f32.mrb[54].mxu0 }
 0x161   :  { %v1069_v6 = vmax.f32 %v870_v2, 0.0  ;;  %v874_v7 = vadd.f32 %v873_v5, %v1985_v33  ;;  %v875_v8 = vpop.f32.mrb[55].mxu0 }
 0x162   :  { %v1070_v9 = vmax.f32 %v872_v4, 0.0  ;;  %v876_v3 = vadd.f32 %v875_v8, %v1985_v33 }
 0x163   :  { %1182 = vst [vmem:[%s2313_s3 + $0x250] sm:$0xff] %v1069_v6  ;;  %v1076_v11 = vmax.f32 %v874_v7, 0.0 }
 0x164   :  { %1183 = vst [vmem:[%s2313_s3 + $0x258] sm:$0xff] %v1070_v9  ;;  %v1077_v12 = vmax.f32 %v876_v3, 0.0 }
 0x165   :  { %1189 = vst [vmem:[%s2313_s3 + $0x288] sm:$0xff] %v1076_v11 }
 0x166   :  { %1190 = vst [vmem:[%s2313_s3 + $0x290] sm:$0xff] %v1077_v12  ;;  %v879_v25 = vpop.f32.mrb[56].mxu0 }
 0x167   :  { %v880_v33 = vadd.f32 %v879_v25, %v2011_v54  ;;  %v881_v13 = vpop.f32.mrb[57].mxu0 }
 0x168   :  { %v882_v14 = vadd.f32 %v881_v13, %v2011_v54  ;;  %v883_v15 = vpop.f32.mrb[58].mxu0 }
 0x169   :  { %v1083_v16 = vmax.f32 %v880_v33, 0.0  ;;  %v884_v17 = vadd.f32 %v883_v15, %v2021_v62  ;;  %v885_v10 = vpop.f32.mrb[59].mxu0 }
 0x16a   :  { %v1084_v18 = vmax.f32 %v882_v14, 0.0  ;;  %v886_v19 = vadd.f32 %v885_v10, %v2021_v62 }
 0x16b   :  { %1196 = vst [vmem:[%s2313_s3 + $0x2c0] sm:$0xff] %v1083_v16  ;;  %v1090_v20 = vmax.f32 %v884_v17, 0.0 }
 0x16c   :  { %1197 = vst [vmem:[%s2313_s3 + $0x2c8] sm:$0xff] %v1084_v18  ;;  %v1091_v23 = vmax.f32 %v886_v19, 0.0 }
 0x16d   :  { %1203 = vst [vmem:[%s2313_s3 + $0x2f8] sm:$0xff] %v1090_v20 }
 0x16e   :  { %1204 = vst [vmem:[%s2313_s3 + $0x300] sm:$0xff] %v1091_v23  ;;  %v889_v54 = vpop.f32.mrb[60].mxu0 }
 0x16f   :  { %v890_v62 = vadd.f32 %v889_v54, %v2047_v21  ;;  %v891_v26 = vpop.f32.mrb[61].mxu0 }
 0x170   :  { %v892_v27 = vadd.f32 %v891_v26, %v2047_v21  ;;  %v893_v28 = vpop.f32.mrb[62].mxu0 }
 0x171   :  { %v1097_v30 = vmax.f32 %v890_v62, 0.0  ;;  %v894_v22 = vadd.f32 %v893_v28, %v2057_v1  ;;  %v895_v31 = vpop.f32.mrb[63].mxu0 }
 0x172   :  { %v1098_v34 = vmax.f32 %v892_v27, 0.0  ;;  %v896_v35 = vadd.f32 %v895_v31, %v2057_v1 }
 0x173   :  { %1210 = vst [vmem:[%s2313_s3 + $0x330] sm:$0xff] %v1097_v30  ;;  %v1104_v24 = vmax.f32 %v894_v22, 0.0 }
 0x174   :  { %1211 = vst [vmem:[%s2313_s3 + $0x338] sm:$0xff] %v1098_v34  ;;  %v1105_v36 = vmax.f32 %v896_v35, 0.0 }
 0x175   :  { %1217 = vst [vmem:[%s2313_s3 + $0x368] sm:$0x3] %v1104_v24 }
 0x176   :  { %1218 = vst [vmem:[%s2313_s3 + $0x370] sm:$0x3] %v1105_v36 }

</bundles_post_ra>
